<compile_context>
chip_gen: v6e
topology: v6e:2x2x1
jax: 0.10.0
libtpu: 0.0.40
codegen_flags: <defaults>
</compile_context>

<pallas_src>
import jax
import jax.numpy as jnp
from jax import lax
from jax.experimental import pallas as pl
from jax.experimental.pallas import tpu as pltpu

LANE = 128                      # lane width (fast axis)
SUB = 8                         # f32 sublanes per vreg
NSTATS = 7                      # number of running sums
CHUNK = 512                     # rows per in-kernel chunk (bounds VMEM temps)
BLOCK_BYTES = 4 * 1024 * 1024   # per-input, per-buffer block budget
NCORES = 2                      # leading "parallel" axis (megacore split)
VMEM_LIMIT = 32 * 1024 * 1024   # explicit scoped-VMEM limit (fits all gens)


def _round_up(a, b):
    return ((a + b - 1) // b) * b


def _make_stats_kernel(m_rows, block_rows, chunk_rows, n_inner, needs_mask):
    """Accumulation kernel for a fixed (static) tiling."""
    n_chunks = block_rows // chunk_rows

    def kernel(x_ref, y_ref, out_ref):
        c = pl.program_id(0)
        i = pl.program_id(1)

        @pl.when(i == 0)
        def _init():
            out_ref[...] = jnp.zeros_like(out_ref)

        def accumulate(masked, row0):
            def row_sum(v):
                # (chunk,128)->(chunk//8,8,128); axis-0 sum = sublane-aligned
                # VPU adds only.  Cross-lane reduction happens once, in the
                # tiny JAX epilogue.
                # (If a bundle dump ever shows VALU saturating on v7x, these
                #  row sums could move to the idle MXU via ones(1,chunk) @ v.)
                return jnp.sum(v.reshape(-1, SUB, LANE), axis=0)

            def chunk_body(j, carry):
                r0 = pl.multiple_of(j * chunk_rows, chunk_rows)
                x = x_ref[pl.ds(r0, chunk_rows), :].astype(jnp.float32)
                y = y_ref[pl.ds(r0, chunk_rows), :].astype(jnp.float32)
                if masked:
                    rows = lax.broadcasted_iota(jnp.int32, x.shape, 0) + (row0 + r0)
                    valid = rows < m_rows
                    x = jnp.where(valid, x, 0.0)
                    y = jnp.where(valid, y, 0.0)
                d = x - y
                xx = x * x
                yy = y * y
                cube = xx * x - yy * y          # reuse x*x / y*y for the cubes
                return (carry[0] + row_sum(x),
                        carry[1] + row_sum(xx),
                        carry[2] + row_sum(y),
                        carry[3] + row_sum(yy),
                        carry[4] + row_sum(d * d),
                        carry[5] + row_sum(jnp.abs(d)),
                        carry[6] + row_sum(cube * cube))

            zero = jnp.zeros((SUB, LANE), jnp.float32)
            carry = lax.fori_loop(0, n_chunks, chunk_body, (zero,) * NSTATS)
            for k in range(NSTATS):
                out_ref[0, k] += carry[k]

        if not needs_mask:
            accumulate(False, 0)
        else:
            row0 = (c * n_inner + i) * block_rows
            # Gate mask work: only tail / duplicate (clamped) blocks pay it.
            @pl.when(row0 + block_rows <= m_rows)
            def _full():
                accumulate(False, row0)

            @pl.when(row0 + block_rows > m_rows)
            def _tail():
                accumulate(True, row0)

    return kernel


def _partial_sums(x2, y2, m, block_rows, chunk_rows, n_outer, n_inner, needs_mask):
    nblk = -(-m // block_rows)
    kernel = _make_stats_kernel(m, block_rows, chunk_rows, n_inner, needs_mask)

    def in_map(c, i):
        # Clamp so block origins never point out of bounds; clamped duplicate
        # blocks take the masked path and contribute exactly zero.
        return (jnp.minimum(c * n_inner + i, nblk - 1), 0)

    in_bytes = x2.size * x2.dtype.itemsize + y2.size * y2.dtype.itemsize
    out_bytes = n_outer * NSTATS * SUB * LANE * 4
    cost = pl.CostEstimate(flops=17 * x2.size, transcendentals=0,
                           bytes_accessed=in_bytes + out_bytes)

    return pl.pallas_call(
        kernel,
        out_shape=jax.ShapeDtypeStruct((n_outer, NSTATS, SUB, LANE), jnp.float32),
        grid_spec=pltpu.PrefetchScalarGridSpec(
            num_scalar_prefetch=0,
            grid=(n_outer, n_inner),
            in_specs=[
                pl.BlockSpec((block_rows, LANE), in_map),
                pl.BlockSpec((block_rows, LANE), in_map),
            ],
            # One resident accumulator block per outer (core) index; the inner
            # (reduction) axis revisits it.
            out_specs=pl.BlockSpec((1, NSTATS, SUB, LANE),
                                   lambda c, i: (c, 0, 0, 0)),
        ),
        compiler_params=pltpu.CompilerParams(
            dimension_semantics=("parallel", "arbitrary"),
            vmem_limit_bytes=VMEM_LIMIT),
        cost_estimate=cost,
    )(x2, y2)


def l3_std_mse(x, y):
    n = x.size
    assert y.size == n, "x and y must have the same number of elements"

    xf = jnp.ravel(x)   # native dtype; kernel upcasts per chunk
    yf = jnp.ravel(y)

    m = n // LANE
    rem = n - m * LANE

    stats = jnp.zeros((NSTATS,), jnp.float32)

    if m > 0:
        if rem:
            x2 = xf[: m * LANE].reshape(m, LANE)
            y2 = yf[: m * LANE].reshape(m, LANE)
        else:
            x2 = xf.reshape(m, LANE)
            y2 = yf.reshape(m, LANE)

        # Dtype-aware tiling: min sublane tile (8 f32 / 16 bf16 / 32 int8) and
        # byte-budgeted block rows.
        itemsize = max(x2.dtype.itemsize, y2.dtype.itemsize)
        sub_tile = SUB * max(1, 4 // itemsize)
        budget_rows = max(CHUNK, (BLOCK_BYTES // (LANE * itemsize)) // CHUNK * CHUNK)

        m_pad = _round_up(m, sub_tile)
        if m_pad <= CHUNK:
            block_rows = m_pad
            chunk_rows = m_pad
        else:
            block_rows = min(budget_rows, _round_up(m_pad, CHUNK))
            chunk_rows = CHUNK

        nblk = -(-m // block_rows)
        n_outer = min(NCORES, nblk)
        n_inner = -(-nblk // n_outer)
        needs_mask = (n_outer * n_inner * block_rows != m)

        parts = _partial_sums(x2, y2, m, block_rows, chunk_rows,
                              n_outer, n_inner, needs_mask)
        stats = stats + jnp.sum(parts, axis=(0, 2, 3))   # tiny 28 KiB epilogue

    if rem:
        # Ragged <128-element tail: tiny pure-JAX epilogue instead of padding
        # (avoids materializing a padded full copy of x / y).
        xt = xf[m * LANE:].astype(jnp.float32)
        yt = yf[m * LANE:].astype(jnp.float32)
        dt = xt - yt
        ct = xt * xt * xt - yt * yt * yt
        tail = jnp.stack([jnp.sum(xt), jnp.sum(xt * xt),
                          jnp.sum(yt), jnp.sum(yt * yt),
                          jnp.sum(dt * dt), jnp.sum(jnp.abs(dt)),
                          jnp.sum(ct * ct)])
        stats = stats + tail

    nf = jnp.float32(n)
    sum_x, sum_xx, sum_y, sum_yy, s_sq, s_abs, s_c = (
        stats[k] for k in range(NSTATS))

    # unbiased std (torch.std default: correction=1), over all elements
    mean_x = sum_x / nf
    mean_y = sum_y / nf
    var_x = jnp.maximum(sum_xx - nf * mean_x * mean_x, 0.0) / (nf - 1.0)
    var_y = jnp.maximum(sum_yy - nf * mean_y * mean_y, 0.0) / (nf - 1.0)
    std = (jnp.sqrt(var_x) - jnp.sqrt(var_y)) ** 2

    mse = s_sq / nf
    mae = s_abs / nf
    l3 = (s_c / nf) ** 0.25
    mme = mse + mae
    return l3 * std * mme ** 4


if __name__ == "__main__":
    key = jax.random.PRNGKey(0)
    kx, ky = jax.random.split(key)
    shape = (2, 4, 16, 16)  # NCHW-style inputs
    x = jax.random.normal(kx, shape, dtype=jnp.float32)
    y = jax.random.normal(ky, shape, dtype=jnp.float32)

    loss = jax.jit(l3_std_mse)(x, y)
    jax.block_until_ready(loss)

    # pure-JAX reference (same math, no Pallas)
    def ref(x, y):
        std = (jnp.std(x, ddof=1) - jnp.std(y, ddof=1)) ** 2
        mse = jnp.mean((x - y) ** 2)
        mae = jnp.mean(jnp.abs(x - y))
        l3 = jnp.mean((x ** 3 - y ** 3) ** 2) ** 0.25
        return l3 * std * (mse + mae) ** 4

    expected = ref(x, y)
    assert jnp.allclose(loss, expected, rtol=2e-3, atol=1e-8), (loss, expected)

    print("KERNEL_OK")
</pallas_src>

<mosaic_0001>
module attributes {stable_mosaic.version = 11 : i64} {
  func.func @kernel(%arg0: i32, %arg1: i32, %arg2: memref<16x128xf32, #tpu.memory_space<vmem>>, %arg3: memref<16x128xf32, #tpu.memory_space<vmem>>, %arg4: memref<1x7x8x128xf32, #tpu.memory_space<vmem>>) attributes {dimension_semantics = [#tpu.dimension_semantics<parallel>, #tpu.dimension_semantics<arbitrary>], iteration_bounds = array<i64: 1, 1>, scalar_prefetch = 0 : i64, scratch_operands = 0 : i64, tpu.core_type = #tpu.core_type<tc>, window_params = [{transform_indices = @transform_0, window_bounds = array<i64: 16, 128>}, {transform_indices = @transform_1, window_bounds = array<i64: 16, 128>}, {transform_indices = @transform_2, window_bounds = array<i64: 1, 7, 8, 128>}]} {
    %c0_i32 = arith.constant 0 : i32
    %0 = arith.cmpi eq, %arg1, %c0_i32 : i32
    %1 = arith.extui %0 : i1 to i32
    %c0_i32_0 = arith.constant 0 : i32
    %2 = arith.cmpi ne, %1, %c0_i32_0 : i32
    scf.if %2 {
      %cst_60 = arith.constant 0.000000e+00 : f32
      %82 = vector.broadcast %cst_60 : f32 to vector<1x7x8x128xf32>
      %c0_61 = arith.constant 0 : index
      %c0_62 = arith.constant 0 : index
      %c0_63 = arith.constant 0 : index
      %c0_64 = arith.constant 0 : index
      %83 = vector.load %arg4[%c0_61, %c0_62, %c0_63, %c0_64] : memref<1x7x8x128xf32, #tpu.memory_space<vmem>>, vector<1x7x8x128xf32>
      tpu.vector_store %arg4[%c0_61, %c0_62, %c0_63, %c0_64], %82 {strides = array<i32>} : memref<1x7x8x128xf32, #tpu.memory_space<vmem>>, vector<1x7x8x128xf32>,
    } else {
    }
    %cst = arith.constant 0.000000e+00 : f32
    %3 = vector.broadcast %cst : f32 to vector<8x128xf32>
    %c0_i32_1 = arith.constant 0 : i32
    %c16_i32 = arith.constant 16 : i32
    %4 = arith.muli %c0_i32_1, %c16_i32 : i32
    %5 = tpu.assume_multiple %4, 16 : i32
    %6 = arith.index_cast %5 : i32 to index
    %c0 = arith.constant 0 : index
    %7 = vector.load %arg2[%6, %c0] : memref<16x128xf32, #tpu.memory_space<vmem>>, vector<16x128xf32>
    %8 = arith.index_cast %5 : i32 to index
    %c0_2 = arith.constant 0 : index
    %9 = vector.load %arg3[%8, %c0_2] : memref<16x128xf32, #tpu.memory_space<vmem>>, vector<16x128xf32>
    %10 = arith.subf %7, %9 : vector<16x128xf32>
    %11 = arith.mulf %7, %7 : vector<16x128xf32>
    %12 = arith.mulf %9, %9 : vector<16x128xf32>
    %13 = arith.mulf %11, %7 : vector<16x128xf32>
    %14 = arith.mulf %12, %9 : vector<16x128xf32>
    %15 = arith.subf %13, %14 : vector<16x128xf32>
    %16 = vector.shape_cast %7 : vector<16x128xf32> to vector<2x8x128xf32>
    %cst_3 = arith.constant dense<0.000000e+00> : vector<8x128xf32>
    %17 = vector.multi_reduction <add>, %16, %cst_3 [0] : vector<2x8x128xf32> to vector<8x128xf32>
    %18 = arith.addf %3, %17 : vector<8x128xf32>
    %19 = vector.shape_cast %11 : vector<16x128xf32> to vector<2x8x128xf32>
    %cst_4 = arith.constant dense<0.000000e+00> : vector<8x128xf32>
    %20 = vector.multi_reduction <add>, %19, %cst_4 [0] : vector<2x8x128xf32> to vector<8x128xf32>
    %21 = arith.addf %3, %20 : vector<8x128xf32>
    %22 = vector.shape_cast %9 : vector<16x128xf32> to vector<2x8x128xf32>
    %cst_5 = arith.constant dense<0.000000e+00> : vector<8x128xf32>
    %23 = vector.multi_reduction <add>, %22, %cst_5 [0] : vector<2x8x128xf32> to vector<8x128xf32>
    %24 = arith.addf %3, %23 : vector<8x128xf32>
    %25 = vector.shape_cast %12 : vector<16x128xf32> to vector<2x8x128xf32>
    %cst_6 = arith.constant dense<0.000000e+00> : vector<8x128xf32>
    %26 = vector.multi_reduction <add>, %25, %cst_6 [0] : vector<2x8x128xf32> to vector<8x128xf32>
    %27 = arith.addf %3, %26 : vector<8x128xf32>
    %28 = arith.mulf %10, %10 : vector<16x128xf32>
    %29 = vector.shape_cast %28 : vector<16x128xf32> to vector<2x8x128xf32>
    %cst_7 = arith.constant dense<0.000000e+00> : vector<8x128xf32>
    %30 = vector.multi_reduction <add>, %29, %cst_7 [0] : vector<2x8x128xf32> to vector<8x128xf32>
    %31 = arith.addf %3, %30 : vector<8x128xf32>
    %32 = math.absf %10 : vector<16x128xf32>
    %33 = vector.shape_cast %32 : vector<16x128xf32> to vector<2x8x128xf32>
    %cst_8 = arith.constant dense<0.000000e+00> : vector<8x128xf32>
    %34 = vector.multi_reduction <add>, %33, %cst_8 [0] : vector<2x8x128xf32> to vector<8x128xf32>
    %35 = arith.addf %3, %34 : vector<8x128xf32>
    %36 = arith.mulf %15, %15 : vector<16x128xf32>
    %37 = vector.shape_cast %36 : vector<16x128xf32> to vector<2x8x128xf32>
    %cst_9 = arith.constant dense<0.000000e+00> : vector<8x128xf32>
    %38 = vector.multi_reduction <add>, %37, %cst_9 [0] : vector<2x8x128xf32> to vector<8x128xf32>
    %39 = arith.addf %3, %38 : vector<8x128xf32>
    %c1_i32 = arith.constant 1 : i32
    %c0_10 = arith.constant 0 : index
    %c0_11 = arith.constant 0 : index
    %c0_12 = arith.constant 0 : index
    %c0_13 = arith.constant 0 : index
    %40 = vector.load %arg4[%c0_10, %c0_11, %c0_12, %c0_13] : memref<1x7x8x128xf32, #tpu.memory_space<vmem>>, vector<1x1x8x128xf32>
    %41 = vector.shape_cast %40 : vector<1x1x8x128xf32> to vector<8x128xf32>
    %42 = arith.addf %41, %18 : vector<8x128xf32>
    %c0_14 = arith.constant 0 : index
    %c0_15 = arith.constant 0 : index
    %c0_16 = arith.constant 0 : index
    %c0_17 = arith.constant 0 : index
    %43 = vector.load %arg4[%c0_14, %c0_15, %c0_16, %c0_17] : memref<1x7x8x128xf32, #tpu.memory_space<vmem>>, vector<1x1x8x128xf32>
    %44 = vector.shape_cast %43 : vector<1x1x8x128xf32> to vector<8x128xf32>
    %45 = vector.shape_cast %42 : vector<8x128xf32> to vector<1x1x8x128xf32>
    tpu.vector_store %arg4[%c0_14, %c0_15, %c0_16, %c0_17], %45 {strides = array<i32>} : memref<1x7x8x128xf32, #tpu.memory_space<vmem>>, vector<1x1x8x128xf32>,
    %c0_18 = arith.constant 0 : index
    %c1 = arith.constant 1 : index
    %c0_19 = arith.constant 0 : index
    %c0_20 = arith.constant 0 : index
    %46 = vector.load %arg4[%c0_18, %c1, %c0_19, %c0_20] : memref<1x7x8x128xf32, #tpu.memory_space<vmem>>, vector<1x1x8x128xf32>
    %47 = vector.shape_cast %46 : vector<1x1x8x128xf32> to vector<8x128xf32>
    %48 = arith.addf %47, %21 : vector<8x128xf32>
    %c0_21 = arith.constant 0 : index
    %c1_22 = arith.constant 1 : index
    %c0_23 = arith.constant 0 : index
    %c0_24 = arith.constant 0 : index
    %49 = vector.load %arg4[%c0_21, %c1_22, %c0_23, %c0_24] : memref<1x7x8x128xf32, #tpu.memory_space<vmem>>, vector<1x1x8x128xf32>
    %50 = vector.shape_cast %49 : vector<1x1x8x128xf32> to vector<8x128xf32>
    %51 = vector.shape_cast %48 : vector<8x128xf32> to vector<1x1x8x128xf32>
    tpu.vector_store %arg4[%c0_21, %c1_22, %c0_23, %c0_24], %51 {strides = array<i32>} : memref<1x7x8x128xf32, #tpu.memory_space<vmem>>, vector<1x1x8x128xf32>,
    %c0_25 = arith.constant 0 : index
    %c2 = arith.constant 2 : index
    %c0_26 = arith.constant 0 : index
    %c0_27 = arith.constant 0 : index
    %52 = vector.load %arg4[%c0_25, %c2, %c0_26, %c0_27] : memref<1x7x8x128xf32, #tpu.memory_space<vmem>>, vector<1x1x8x128xf32>
    %53 = vector.shape_cast %52 : vector<1x1x8x128xf32> to vector<8x128xf32>
    %54 = arith.addf %53, %24 : vector<8x128xf32>
    %c0_28 = arith.constant 0 : index
    %c2_29 = arith.constant 2 : index
    %c0_30 = arith.constant 0 : index
    %c0_31 = arith.constant 0 : index
    %55 = vector.load %arg4[%c0_28, %c2_29, %c0_30, %c0_31] : memref<1x7x8x128xf32, #tpu.memory_space<vmem>>, vector<1x1x8x128xf32>
    %56 = vector.shape_cast %55 : vector<1x1x8x128xf32> to vector<8x128xf32>
    %57 = vector.shape_cast %54 : vector<8x128xf32> to vector<1x1x8x128xf32>
    tpu.vector_store %arg4[%c0_28, %c2_29, %c0_30, %c0_31], %57 {strides = array<i32>} : memref<1x7x8x128xf32, #tpu.memory_space<vmem>>, vector<1x1x8x128xf32>,
    %c0_32 = arith.constant 0 : index
    %c3 = arith.constant 3 : index
    %c0_33 = arith.constant 0 : index
    %c0_34 = arith.constant 0 : index
    %58 = vector.load %arg4[%c0_32, %c3, %c0_33, %c0_34] : memref<1x7x8x128xf32, #tpu.memory_space<vmem>>, vector<1x1x8x128xf32>
    %59 = vector.shape_cast %58 : vector<1x1x8x128xf32> to vector<8x128xf32>
    %60 = arith.addf %59, %27 : vector<8x128xf32>
    %c0_35 = arith.constant 0 : index
    %c3_36 = arith.constant 3 : index
    %c0_37 = arith.constant 0 : index
    %c0_38 = arith.constant 0 : index
    %61 = vector.load %arg4[%c0_35, %c3_36, %c0_37, %c0_38] : memref<1x7x8x128xf32, #tpu.memory_space<vmem>>, vector<1x1x8x128xf32>
    %62 = vector.shape_cast %61 : vector<1x1x8x128xf32> to vector<8x128xf32>
    %63 = vector.shape_cast %60 : vector<8x128xf32> to vector<1x1x8x128xf32>
    tpu.vector_store %arg4[%c0_35, %c3_36, %c0_37, %c0_38], %63 {strides = array<i32>} : memref<1x7x8x128xf32, #tpu.memory_space<vmem>>, vector<1x1x8x128xf32>,
    %c0_39 = arith.constant 0 : index
    %c4 = arith.constant 4 : index
    %c0_40 = arith.constant 0 : index
    %c0_41 = arith.constant 0 : index
    %64 = vector.load %arg4[%c0_39, %c4, %c0_40, %c0_41] : memref<1x7x8x128xf32, #tpu.memory_space<vmem>>, vector<1x1x8x128xf32>
    %65 = vector.shape_cast %64 : vector<1x1x8x128xf32> to vector<8x128xf32>
    %66 = arith.addf %65, %31 : vector<8x128xf32>
    %c0_42 = arith.constant 0 : index
    %c4_43 = arith.constant 4 : index
    %c0_44 = arith.constant 0 : index
    %c0_45 = arith.constant 0 : index
    %67 = vector.load %arg4[%c0_42, %c4_43, %c0_44, %c0_45] : memref<1x7x8x128xf32, #tpu.memory_space<vmem>>, vector<1x1x8x128xf32>
    %68 = vector.shape_cast %67 : vector<1x1x8x128xf32> to vector<8x128xf32>
    %69 = vector.shape_cast %66 : vector<8x128xf32> to vector<1x1x8x128xf32>
    tpu.vector_store %arg4[%c0_42, %c4_43, %c0_44, %c0_45], %69 {strides = array<i32>} : memref<1x7x8x128xf32, #tpu.memory_space<vmem>>, vector<1x1x8x128xf32>,
    %c0_46 = arith.constant 0 : index
    %c5 = arith.constant 5 : index
    %c0_47 = arith.constant 0 : index
    %c0_48 = arith.constant 0 : index
    %70 = vector.load %arg4[%c0_46, %c5, %c0_47, %c0_48] : memref<1x7x8x128xf32, #tpu.memory_space<vmem>>, vector<1x1x8x128xf32>
    %71 = vector.shape_cast %70 : vector<1x1x8x128xf32> to vector<8x128xf32>
    %72 = arith.addf %71, %35 : vector<8x128xf32>
    %c0_49 = arith.constant 0 : index
    %c5_50 = arith.constant 5 : index
    %c0_51 = arith.constant 0 : index
    %c0_52 = arith.constant 0 : index
    %73 = vector.load %arg4[%c0_49, %c5_50, %c0_51, %c0_52] : memref<1x7x8x128xf32, #tpu.memory_space<vmem>>, vector<1x1x8x128xf32>
    %74 = vector.shape_cast %73 : vector<1x1x8x128xf32> to vector<8x128xf32>
    %75 = vector.shape_cast %72 : vector<8x128xf32> to vector<1x1x8x128xf32>
    tpu.vector_store %arg4[%c0_49, %c5_50, %c0_51, %c0_52], %75 {strides = array<i32>} : memref<1x7x8x128xf32, #tpu.memory_space<vmem>>, vector<1x1x8x128xf32>,
    %c0_53 = arith.constant 0 : index
    %c6 = arith.constant 6 : index
    %c0_54 = arith.constant 0 : index
    %c0_55 = arith.constant 0 : index
    %76 = vector.load %arg4[%c0_53, %c6, %c0_54, %c0_55] : memref<1x7x8x128xf32, #tpu.memory_space<vmem>>, vector<1x1x8x128xf32>
    %77 = vector.shape_cast %76 : vector<1x1x8x128xf32> to vector<8x128xf32>
    %78 = arith.addf %77, %39 : vector<8x128xf32>
    %c0_56 = arith.constant 0 : index
    %c6_57 = arith.constant 6 : index
    %c0_58 = arith.constant 0 : index
    %c0_59 = arith.constant 0 : index
    %79 = vector.load %arg4[%c0_56, %c6_57, %c0_58, %c0_59] : memref<1x7x8x128xf32, #tpu.memory_space<vmem>>, vector<1x1x8x128xf32>
    %80 = vector.shape_cast %79 : vector<1x1x8x128xf32> to vector<8x128xf32>
    %81 = vector.shape_cast %78 : vector<8x128xf32> to vector<1x1x8x128xf32>
    tpu.vector_store %arg4[%c0_56, %c6_57, %c0_58, %c0_59], %81 {strides = array<i32>} : memref<1x7x8x128xf32, #tpu.memory_space<vmem>>, vector<1x1x8x128xf32>,
    return
  }
  func.func @transform_0(%arg0: i32, %arg1: i32) -> (i32, i32) {
    %c1_i32 = arith.constant 1 : i32
    %0 = arith.muli %arg0, %c1_i32 : i32
    %1 = arith.addi %0, %arg1 : i32
    %c0_i32 = arith.constant 0 : i32
    %2 = arith.minsi %1, %c0_i32 : i32
    %c0_i32_0 = arith.constant 0 : i32
    %c0_i32_1 = arith.constant 0 : i32
    return %2, %c0_i32_0 : i32, i32
  }
  func.func @transform_1(%arg0: i32, %arg1: i32) -> (i32, i32) {
    %c1_i32 = arith.constant 1 : i32
    %0 = arith.muli %arg0, %c1_i32 : i32
    %1 = arith.addi %0, %arg1 : i32
    %c0_i32 = arith.constant 0 : i32
    %2 = arith.minsi %1, %c0_i32 : i32
    %c0_i32_0 = arith.constant 0 : i32
    %c0_i32_1 = arith.constant 0 : i32
    return %2, %c0_i32_0 : i32, i32
  }
  func.func @transform_2(%arg0: i32, %arg1: i32) -> (i32, i32, i32, i32) {
    %c0_i32 = arith.constant 0 : i32
    %c0_i32_0 = arith.constant 0 : i32
    %c0_i32_1 = arith.constant 0 : i32
    %c0_i32_2 = arith.constant 0 : i32
    return %arg0, %c0_i32, %c0_i32_0, %c0_i32_1 : i32, i32, i32, i32
  }
}

</mosaic_0001>

<bundles_post_ra>
// kernel: l3_std_mse.1
= control target key start
LH: loop header
LB: loop body
LE: loop exit
PB: predicated region body
PF: predicated region fallthrough
CT: control target
= control target key end

     0   :  { %s226_s0 = inlined_call_operand.vmem [shape: f32[16,128], index: 0, kind: input, shape index: {}]   ;;  %s227_s1 = inlined_call_operand.vmem [shape: f32[16,128], index: 1, kind: input, shape index: {}]   ;;  %s228_s2 = inlined_call_operand.vmem [shape: f32[1,7,8,128], index: 2, kind: output, shape index: {}]  }
   0x1   :  { %v86_v0 = vld [vmem:[%s226_s0] sm:$0xff]  ;;  %v87_v1 = vld [vmem:[%s226_s0 + $0x8] sm:$0xff] }
   0x2   :  { %v88_v2 = vld [vmem:[%s227_s1] sm:$0xff]  ;;  %v102_v3 = vadd.f32 %v87_v1, %v86_v0  ;;  %v92_v4 = vmul.f32 %v86_v0, %v86_v0  ;;  %v93_v5 = vmul.f32 %v87_v1, %v87_v1  ;;  %v89_v6 = vld [vmem:[%s227_s1 + $0x8] sm:$0xff] }
   0x3   :  { %v94_v7 = vmul.f32 %v88_v2, %v88_v2  ;;  %v106_v8 = vadd.f32 %v89_v6, %v88_v2  ;;  %v95_v9 = vmul.f32 %v89_v6, %v89_v6  ;;  %v90_v10 = vsub.f32 %v86_v0, %v88_v2 }
   0x4   :  { %v91_v11 = vsub.f32 %v87_v1, %v89_v6  ;;  %v96_v12 = vmul.f32 %v92_v4, %v86_v0  ;;  %v97_v13 = vmul.f32 %v93_v5, %v87_v1  ;;  %v104_v14 = vadd.f32 %v93_v5, %v92_v4  ;;  %124 = vst [vmem:[%s228_s2] sm:$0xff] %v102_v3 }
   0x5   :  { %v98_v15 = vmul.f32 %v94_v7, %v88_v2  ;;  %v99_v16 = vmul.f32 %v95_v9, %v89_v6  ;;  %v108_v17 = vadd.f32 %v95_v9, %v94_v7  ;;  %v110_v18 = vmul.f32 %v90_v10, %v90_v10  ;;  %168 = vst [vmem:[%s228_s2 + $0x10] sm:$0xff] %v106_v8 }
   0x6   :  { %v111_v19 = vmul.f32 %v91_v11, %v91_v11  ;;  %v114_v20 = vand.u32 2147483647, %v90_v10  ;;  %v115_v21 = vand.u32 2147483647, %v91_v11  ;;  %166 = vst [vmem:[%s228_s2 + $0x8] sm:$0xff] %v104_v14 }
   0x7   :  { %v100_v22 = vsub.f32 %v96_v12, %v98_v15  ;;  %v101_v23 = vsub.f32 %v97_v13, %v99_v16  ;;  %170 = vst [vmem:[%s228_s2 + $0x18] sm:$0xff] %v108_v17 }
   0x8   :  { %v112_v24 = vadd.f32 %v111_v19, %v110_v18  ;;  %v116_v25 = vadd.f32 %v115_v21, %v114_v20 }
   0x9   :  { %v118_v26 = vmul.f32 %v100_v22, %v100_v22  ;;  %v119_v27 = vmul.f32 %v101_v23, %v101_v23 }
   0xa   :  { %172 = vst [vmem:[%s228_s2 + $0x20] sm:$0xff] %v112_v24  ;;  %174 = vst [vmem:[%s228_s2 + $0x28] sm:$0xff] %v116_v25 }
   0xb   :  { %v120_v28 = vadd.f32 %v119_v27, %v118_v26 }
   0xd   :  { %176 = vst [vmem:[%s228_s2 + $0x30] sm:$0xff] %v120_v28 }

</bundles_post_ra>
